<compile_context>
chip_gen: v5e
topology: v5e:2x2
jax: 0.10.0
libtpu: 0.0.40
codegen_flags: <defaults>
</compile_context>

<pallas_src>
import numpy as np
import jax
import jax.numpy as jnp
from jax.experimental import pallas as pl
from jax.experimental.pallas import tpu as pltpu

# matcher weights (module __init__ defaults)
COST_OBJ_CLASS = 1.0
COST_VERB_CLASS = 1.0
COST_BBOX = 1.0
COST_GIOU = 1.0

# row layout of the packed target-constant block [N_TC_ROWS, T_pad]
_ROW_SUB_CXCYWH = 0
_ROW_OBJ_CXCYWH = 4
_ROW_SUB_XYXY = 8
_ROW_OBJ_XYXY = 12
_ROW_SUB_AREA = 16
_ROW_OBJ_AREA = 17
_ROW_ANY_NZ = 18
_ROW_ALL_ZERO = 19
_ROW_VERB_CONST = 20
_N_TC_ROWS = 24          # padded to a multiple of 8 sublanes


def _round_up(x, m):
    return ((x + m - 1) // m) * m


# ------------------------------- kernel helpers -----------------------------------
def _cdist_l1(a_cols, b_cols):
    # a_cols: 4 x [blk, 1], b_cols: 4 x [1, T]  ->  [blk, T]
    c = jnp.abs(a_cols[0] - b_cols[0])
    for k in range(1, 4):
        c = c + jnp.abs(a_cols[k] - b_cols[k])
    return c


def _cxcywh_to_xyxy_cols(cx, cy, w, h):
    hw = 0.5 * w
    hh = 0.5 * h
    return cx - hw, cy - hh, cx + hw, cy + hh


def _pairwise_giou(a_xy, b_xy, area_b):
    # a_xy: 4 x [blk, 1] xyxy, b_xy: 4 x [1, T] xyxy, area_b: [1, T]  -> [blk, T]
    ax0, ay0, ax1, ay1 = a_xy
    bx0, by0, bx1, by1 = b_xy
    area_a = (ax1 - ax0) * (ay1 - ay0)                                  # [blk, 1]
    inter = (jnp.maximum(jnp.minimum(ax1, bx1) - jnp.maximum(ax0, bx0), 0.0)
             * jnp.maximum(jnp.minimum(ay1, by1) - jnp.maximum(ay0, by0), 0.0))
    union = area_a + area_b - inter
    earea = (jnp.maximum(jnp.maximum(ax1, bx1) - jnp.minimum(ax0, bx0), 0.0)
             * jnp.maximum(jnp.maximum(ay1, by1) - jnp.minimum(ay0, by0), 0.0))
    # exact divides here (NOT approx reciprocal): degenerate / near-zero areas
    # amplify approx-reciprocal error and could flip near-tie assignments.
    return inter / union - (earea - union) / earea


# ----------------------------------- wrapper ---------------------------------------
def hoi_matcher_cost(pred_obj_logits, pred_verb_logits, pred_sub_boxes, pred_obj_boxes,
                     tgt_obj_labels, tgt_verb_labels, tgt_sub_boxes, tgt_obj_boxes,
                     *, block_nq=128):
    """Returns the cost tensor C with shape [bs, num_queries, total_targets]."""
    f32 = jnp.float32
    bs, nq, n_obj_cls = pred_obj_logits.shape
    n_verb_cls = pred_verb_logits.shape[-1]
    n_cls = n_obj_cls + n_verb_cls
    NQ = bs * nq
    T = int(tgt_obj_labels.shape[0])

    # ---- padding: lane-dense T and prediction-feature axes -------------------------
    T_pad = max(128, _round_up(T, 128))
    P = n_cls + 8
    P_pad = max(128, _round_up(P, 128))

    # ---- block / grid selection -----------------------------------------------------
    # Even grid >= 2 so a 2-TensorCore chip (v7x) shards the "parallel" axis; one
    # extra ~0.35us step is noise on single-TC v5e/v6e.  blk <= 128 keeps the number
    # of live [blk, T_pad] f32 temporaries within the 64-entry vreg file, and blk is
    # a (near-)divisor of NQ so at most one extra 8-row block of padding is copied.
    NQ8 = _round_up(max(NQ, 1), 8)
    g = max(2, pl.cdiv(NQ8, block_nq))
    g = g + (g % 2)
    blk = _round_up(pl.cdiv(NQ8, g), 8)
    NQ_pad = g * blk

    # ---- one lane-dense prediction slab (single DMA per grid step) ------------------
    pred = jnp.concatenate(
        [pred_obj_logits.reshape(NQ, n_obj_cls),
         pred_verb_logits.reshape(NQ, n_verb_cls),
         pred_sub_boxes.reshape(NQ, 4),
         pred_obj_boxes.reshape(NQ, 4)], axis=-1)
    pred = jnp.pad(pred, ((0, NQ_pad - NQ), (0, P_pad - P)))

    # ---- target-only math hoisted out of the kernel ---------------------------------
    one_hot_t = jax.nn.one_hot(tgt_obj_labels, n_obj_cls, dtype=f32).T       # [Cobj, T]
    tvt = tgt_verb_labels.astype(f32).T                                       # [Cverb, T]
    col = jnp.sum(tvt, axis=0)                                                # [T]
    inv_pos = 1.0 / (col + 1e-4)
    inv_neg = 1.0 / ((n_verb_cls - col) + 1e-4)
    # Fused class RHS so both class costs come out of ONE bf16 MXU matmul:
    #   acc = [softmax(obj_logits) | sigmoid(verb_logits)] @ rhs + verb_const
    # (the (1-vp)@(1-tvt) term is expanded; its row-sum part becomes the constant
    #  0.5*inv_neg added to every RHS row, its column part becomes verb_const).
    r_obj = (-COST_OBJ_CLASS) * one_hot_t
    r_verb = ((-0.5 * COST_VERB_CLASS) * (tvt * (inv_pos + inv_neg)[None, :])
              + (0.5 * COST_VERB_CLASS) * inv_neg[None, :])
    rhs = jnp.concatenate([r_obj, r_verb], axis=0)                            # [n_cls, T]
    rhs = jnp.pad(rhs, ((0, 0), (0, T_pad - T))).astype(jnp.bfloat16)
    verb_const = (-0.5 * COST_VERB_CLASS) * ((n_verb_cls - col) * inv_neg)    # [T]

    tsb = tgt_sub_boxes.astype(f32)
    tob = tgt_obj_boxes.astype(f32)

    def to_xyxy_rows(b):                                                      # [T,4]->[4,T]
        cx, cy, w, h = b[:, 0], b[:, 1], b[:, 2], b[:, 3]
        return jnp.stack([cx - 0.5 * w, cy - 0.5 * h, cx + 0.5 * w, cy + 0.5 * h], axis=0)

    tsb_xy = to_xyxy_rows(tsb)
    tob_xy = to_xyxy_rows(tob)
    tsb_area = ((tsb_xy[2] - tsb_xy[0]) * (tsb_xy[3] - tsb_xy[1]))[None, :]
    tob_area = ((tob_xy[2] - tob_xy[0]) * (tob_xy[3] - tob_xy[1]))[None, :]
    any_nz = jnp.any(tob != 0, axis=1).astype(f32)[None, :]
    all_zero = 1.0 - any_nz

    tconst = jnp.concatenate(
        [tsb.T, tob.T, tsb_xy, tob_xy, tsb_area, tob_area, any_nz, all_zero,
         verb_const[None, :], jnp.zeros((_N_TC_ROWS - 21, T), f32)], axis=0)  # [24, T]
    tconst = jnp.pad(tconst, ((0, 0), (0, T_pad - T)))

    # ----------------------------------- kernel --------------------------------------
    def kernel(pred_ref, rhs_ref, tc_ref, o_ref):
        # class costs: exp/sigmoid in f32 (EUP), one fused bf16 MXU matmul.
        obj_logits = pred_ref[:, :n_obj_cls].astype(f32)
        verb_logits = pred_ref[:, n_obj_cls:n_cls].astype(f32)
        e = jnp.exp(obj_logits - jnp.max(obj_logits, axis=-1, keepdims=True))
        p_obj = e * pl.reciprocal(jnp.sum(e, axis=-1, keepdims=True), approx=True)
        p_verb = jax.nn.sigmoid(verb_logits)
        lhs = jnp.concatenate([p_obj, p_verb], axis=-1).astype(jnp.bfloat16)
        acc = jnp.dot(lhs, rhs_ref[...], preferred_element_type=f32)          # [blk, T_pad]

        tc = tc_ref[...]                                                      # [24, T_pad]

        def row(r):
            return tc[r:r + 1, :]

        acc = acc + row(_ROW_VERB_CONST)

        # predicted boxes (cxcywh), one column slice each, shared by L1 and GIoU
        sub = pred_ref[:, n_cls:n_cls + 4].astype(f32)                        # [blk, 4]
        obj = pred_ref[:, n_cls + 4:n_cls + 8].astype(f32)
        sub_c = tuple(sub[:, k:k + 1] for k in range(4))
        obj_c = tuple(obj[:, k:k + 1] for k in range(4))
        tsub_c = tuple(row(_ROW_SUB_CXCYWH + k) for k in range(4))
        tobj_c = tuple(row(_ROW_OBJ_CXCYWH + k) for k in range(4))

        # L1 bbox cost (accumulate immediately -> fewer live [blk,T] temporaries)
        cost_bbox = jnp.maximum(_cdist_l1(sub_c, tsub_c),
                                _cdist_l1(obj_c, tobj_c) * row(_ROW_ANY_NZ))
        acc = acc + COST_BBOX * cost_bbox

        # GIoU cost (target xyxy + areas precomputed in the wrapper)
        tsub_xy = tuple(row(_ROW_SUB_XYXY + k) for k in range(4))
        tobj_xy = tuple(row(_ROW_OBJ_XYXY + k) for k in range(4))
        cost_sub_giou = -_pairwise_giou(_cxcywh_to_xyxy_cols(*sub_c), tsub_xy,
                                        row(_ROW_SUB_AREA))
        cost_obj_giou = (-_pairwise_giou(_cxcywh_to_xyxy_cols(*obj_c), tobj_xy,
                                         row(_ROW_OBJ_AREA))
                         + cost_sub_giou * row(_ROW_ALL_ZERO))
        acc = acc + COST_GIOU * jnp.maximum(cost_sub_giou, cost_obj_giou)

        o_ref[...] = acc

    grid = (NQ_pad // blk,)
    C = pl.pallas_call(
        kernel,
        out_shape=jax.ShapeDtypeStruct((NQ_pad, T_pad), jnp.float32),
        grid_spec=pltpu.PrefetchScalarGridSpec(
            num_scalar_prefetch=0,
            grid=grid,
            in_specs=[
                pl.BlockSpec((blk, P_pad), lambda i: (i, 0)),
                # targets: constant index_map -> VMEM-resident across the grid
                # (tiny blocks; extra double-buffer copy is negligible here)
                pl.BlockSpec((n_cls, T_pad), lambda i: (0, 0)),
                pl.BlockSpec((_N_TC_ROWS, T_pad), lambda i: (0, 0)),
            ],
            out_specs=pl.BlockSpec((blk, T_pad), lambda i: (i, 0)),
        ),
        compiler_params=pltpu.CompilerParams(
            dimension_semantics=("parallel",),
            vmem_limit_bytes=32 * 1024 * 1024),
    )(pred, rhs, tconst)
    # TODO(synk): for very large T (T_pad in the thousands) add a second grid axis
    # over T_pad instead of a single resident T block, to stay inside v7x's VMEM.
    return C[:NQ, :T].reshape(bs, nq, T)


# ------------------------------ reference (plain JAX) -----------------------------
def _ref_cost(pred_obj_logits, pred_verb_logits, pred_sub_boxes, pred_obj_boxes,
              tgt_obj_labels, tgt_verb_labels, tgt_sub_boxes, tgt_obj_boxes):
    bs, nq, _ = pred_obj_logits.shape
    op = jax.nn.softmax(pred_obj_logits.reshape(bs * nq, -1), axis=-1)
    vp = jax.nn.sigmoid(pred_verb_logits.reshape(bs * nq, -1))
    sb = pred_sub_boxes.reshape(bs * nq, 4)
    ob = pred_obj_boxes.reshape(bs * nq, 4)

    cost_obj_class = -op[:, tgt_obj_labels]
    tvt = tgt_verb_labels.T
    cost_verb_class = -(vp @ tvt / (tvt.sum(0, keepdims=True) + 1e-4)
                        + (1 - vp) @ (1 - tvt) / ((1 - tvt).sum(0, keepdims=True) + 1e-4)) / 2

    def cdist1(a, b):
        return jnp.abs(a[:, None, :] - b[None, :, :]).sum(-1)

    def cxcywh_to_xyxy(x):
        cx, cy, w, h = x[..., 0], x[..., 1], x[..., 2], x[..., 3]
        return jnp.stack([cx - 0.5 * w, cy - 0.5 * h, cx + 0.5 * w, cy + 0.5 * h], -1)

    def giou(a, b):
        area_a = (a[:, 2] - a[:, 0]) * (a[:, 3] - a[:, 1])
        area_b = (b[:, 2] - b[:, 0]) * (b[:, 3] - b[:, 1])
        lt = jnp.maximum(a[:, None, :2], b[None, :, :2])
        rb = jnp.minimum(a[:, None, 2:], b[None, :, 2:])
        wh = jnp.clip(rb - lt, 0)
        inter = wh[..., 0] * wh[..., 1]
        union = area_a[:, None] + area_b[None, :] - inter
        iou = inter / union
        elt = jnp.minimum(a[:, None, :2], b[None, :, :2])
        erb = jnp.maximum(a[:, None, 2:], b[None, :, 2:])
        ewh = jnp.clip(erb - elt, 0)
        earea = ewh[..., 0] * ewh[..., 1]
        return iou - (earea - union) / earea

    any_nz = (tgt_obj_boxes != 0).any(1)[None, :]
    all_z = (tgt_obj_boxes == 0).all(1)[None, :]
    cost_sub_bbox = cdist1(sb, tgt_sub_boxes)
    cost_obj_bbox = cdist1(ob, tgt_obj_boxes) * any_nz
    cost_bbox = jnp.maximum(cost_sub_bbox, cost_obj_bbox)
    cost_sub_giou = -giou(cxcywh_to_xyxy(sb), cxcywh_to_xyxy(tgt_sub_boxes))
    cost_obj_giou = -giou(cxcywh_to_xyxy(ob), cxcywh_to_xyxy(tgt_obj_boxes)) + cost_sub_giou * all_z
    cost_giou = jnp.maximum(cost_sub_giou, cost_obj_giou)

    C = (COST_OBJ_CLASS * cost_obj_class + COST_VERB_CLASS * cost_verb_class
         + COST_BBOX * cost_bbox + COST_GIOU * cost_giou)
    return C.reshape(bs, nq, -1)


if __name__ == "__main__":
    key = jax.random.PRNGKey(0)
    bs, nq = 2, 8
    n_obj_cls, n_verb_cls = 12, 8
    sizes = [3, 2]              # targets per batch element
    T = sum(sizes)

    ks = jax.random.split(key, 10)
    pred_obj_logits = jax.random.normal(ks[0], (bs, nq, n_obj_cls), jnp.float32)
    pred_verb_logits = jax.random.normal(ks[1], (bs, nq, n_verb_cls), jnp.float32)
    # cxcywh boxes with positive w,h so xyxy conversion is valid
    pred_sub_boxes = jnp.concatenate(
        [jax.random.uniform(ks[2], (bs, nq, 2), minval=0.2, maxval=0.8),
         jax.random.uniform(ks[3], (bs, nq, 2), minval=0.05, maxval=0.4)], -1)
    pred_obj_boxes = jnp.concatenate(
        [jax.random.uniform(ks[4], (bs, nq, 2), minval=0.2, maxval=0.8),
         jax.random.uniform(ks[5], (bs, nq, 2), minval=0.05, maxval=0.4)], -1)

    tgt_obj_labels = jax.random.randint(ks[6], (T,), 0, n_obj_cls)
    tgt_verb_labels = (jax.random.uniform(ks[7], (T, n_verb_cls)) > 0.6).astype(jnp.float32)
    tgt_sub_boxes = jnp.concatenate(
        [jax.random.uniform(ks[8], (T, 2), minval=0.2, maxval=0.8),
         jax.random.uniform(ks[8], (T, 2), minval=0.05, maxval=0.4)], -1)
    tgt_obj_boxes = jnp.concatenate(
        [jax.random.uniform(ks[9], (T, 2), minval=0.2, maxval=0.8),
         jax.random.uniform(ks[9], (T, 2), minval=0.05, maxval=0.4)], -1)
    # make one target object box all-zeros to exercise the masking paths
    tgt_obj_boxes = tgt_obj_boxes.at[-1].set(0.0)

    C = hoi_matcher_cost(pred_obj_logits, pred_verb_logits, pred_sub_boxes, pred_obj_boxes,
                         tgt_obj_labels, tgt_verb_labels, tgt_sub_boxes, tgt_obj_boxes)
    C = jax.block_until_ready(C)

    C_ref = _ref_cost(pred_obj_logits, pred_verb_logits, pred_sub_boxes, pred_obj_boxes,
                      tgt_obj_labels, tgt_verb_labels, tgt_sub_boxes, tgt_obj_boxes)
    # Tolerance reflects bf16 MXU operands for the fused class-cost matmul
    # (worst-case ~1e-2 abs on cost values of O(1)) plus the approx softmax
    # reciprocal; far tighter than the Hungarian argmin needs.
    np.testing.assert_allclose(np.asarray(C), np.asarray(C_ref), rtol=2e-2, atol=2e-2)

    # Hungarian assignment post-processing (CPU glue, same as .cpu() + scipy in torch)
    try:
        from scipy.optimize import linear_sum_assignment
        Cn = np.asarray(C)
        offsets = np.cumsum([0] + sizes)
        indices = [linear_sum_assignment(Cn[b, :, offsets[b]:offsets[b + 1]])
                   for b in range(bs)]
        _ = [(np.asarray(i, np.int64), np.asarray(j, np.int64)) for i, j in indices]
    except ImportError:
        # TODO(synk): linear_sum_assignment (Hungarian algorithm) has no Pallas
        # equivalent; it stays on the host as in the reference (.cpu() + scipy).
        pass

    print("KERNEL_OK")
</pallas_src>

<mosaic_0001>
module attributes {stable_mosaic.version = 11 : i64} {
  func.func @kernel(%arg0: i32, %arg1: memref<8x128xf32, #tpu.memory_space<vmem>>, %arg2: memref<20x128xbf16, #tpu.memory_space<vmem>>, %arg3: memref<24x128xf32, #tpu.memory_space<vmem>>, %arg4: memref<8x128xf32, #tpu.memory_space<vmem>>) attributes {dimension_semantics = [#tpu.dimension_semantics<parallel>], iteration_bounds = array<i64: 2>, scalar_prefetch = 0 : i64, scratch_operands = 0 : i64, tpu.core_type = #tpu.core_type<tc>, window_params = [{transform_indices = @transform_0, window_bounds = array<i64: 8, 128>}, {pipeline_mode = #tpu.pipeline_mode<synchronous>, transform_indices = @transform_1, window_bounds = array<i64: 20, 128>}, {pipeline_mode = #tpu.pipeline_mode<synchronous>, transform_indices = @transform_2, window_bounds = array<i64: 24, 128>}, {transform_indices = @transform_3, window_bounds = array<i64: 8, 128>}]} {
    %c0 = arith.constant 0 : index
    %c0_0 = arith.constant 0 : index
    %0 = vector.load %arg1[%c0, %c0_0] : memref<8x128xf32, #tpu.memory_space<vmem>>, vector<8x12xf32>
    %c0_1 = arith.constant 0 : index
    %c12 = arith.constant 12 : index
    %1 = vector.load %arg1[%c0_1, %c12] : memref<8x128xf32, #tpu.memory_space<vmem>>, vector<8x8xf32>
    %cst = arith.constant dense<0xFF800000> : vector<8xf32>
    %2 = vector.multi_reduction <maximumf>, %0, %cst [1] : vector<8x12xf32> to vector<8xf32>
    %3 = vector.shape_cast %2 : vector<8xf32> to vector<8x1xf32>
    %4 = vector.broadcast %3 : vector<8x1xf32> to vector<8x12xf32>
    %5 = arith.subf %0, %4 : vector<8x12xf32>
    %6 = math.exp %5 : vector<8x12xf32>
    %cst_2 = arith.constant dense<0.000000e+00> : vector<8xf32>
    %7 = vector.multi_reduction <add>, %6, %cst_2 [1] : vector<8x12xf32> to vector<8xf32>
    %8 = vector.shape_cast %7 : vector<8xf32> to vector<8x1xf32>
    %9 = tpu.reciprocal %8 {approx = true} : vector<8x1xf32> -> vector<8x1xf32>
    %10 = vector.broadcast %9 : vector<8x1xf32> to vector<8x12xf32>
    %11 = arith.mulf %6, %10 : vector<8x12xf32>
    %12 = arith.negf %1 : vector<8x8xf32>
    %13 = math.exp %12 : vector<8x8xf32>
    %cst_3 = arith.constant 1.000000e+00 : f32
    %14 = vector.broadcast %cst_3 : f32 to vector<8x8xf32>
    %15 = arith.addf %14, %13 : vector<8x8xf32>
    %16 = arith.divf %14, %15 : vector<8x8xf32>
    %17 = tpu.concatenate %11, %16 in 1 : vector<8x12xf32>, vector<8x8xf32> -> vector<8x20xf32>
    %18 = arith.truncf %17 : vector<8x20xf32> to vector<8x20xbf16>
    %c0_4 = arith.constant 0 : index
    %c0_5 = arith.constant 0 : index
    %19 = vector.load %arg2[%c0_4, %c0_5] : memref<20x128xbf16, #tpu.memory_space<vmem>>, vector<20x128xbf16>
    %cst_6 = arith.constant dense<0.000000e+00> : vector<8x128xf32>
    %20 = tpu.matmul %18, %19, %cst_6 {dimension_numbers = #tpu.dot_dimension_numbers<[1], [0], [0], [1], [0, 0, 1, 1], [], []>} : vector<8x20xbf16>, vector<20x128xbf16>, vector<8x128xf32> -> vector<8x128xf32>
    %c0_7 = arith.constant 0 : index
    %c0_8 = arith.constant 0 : index
    %21 = vector.load %arg3[%c0_7, %c0_8] : memref<24x128xf32, #tpu.memory_space<vmem>>, vector<24x128xf32>
    %22 = vector.extract_strided_slice %21 {offsets = [20, 0], sizes = [1, 128], strides = [1, 1]} : vector<24x128xf32> to vector<1x128xf32>
    %23 = vector.broadcast %22 : vector<1x128xf32> to vector<8x128xf32>
    %24 = arith.addf %20, %23 : vector<8x128xf32>
    %c0_9 = arith.constant 0 : index
    %c20 = arith.constant 20 : index
    %25 = vector.load %arg1[%c0_9, %c20] : memref<8x128xf32, #tpu.memory_space<vmem>>, vector<8x4xf32>
    %c0_10 = arith.constant 0 : index
    %c24 = arith.constant 24 : index
    %26 = vector.load %arg1[%c0_10, %c24] : memref<8x128xf32, #tpu.memory_space<vmem>>, vector<8x4xf32>
    %27 = vector.extract_strided_slice %25 {offsets = [0, 0], sizes = [8, 1], strides = [1, 1]} : vector<8x4xf32> to vector<8x1xf32>
    %28 = vector.extract_strided_slice %25 {offsets = [0, 1], sizes = [8, 1], strides = [1, 1]} : vector<8x4xf32> to vector<8x1xf32>
    %29 = vector.extract_strided_slice %25 {offsets = [0, 2], sizes = [8, 1], strides = [1, 1]} : vector<8x4xf32> to vector<8x1xf32>
    %30 = vector.extract_strided_slice %25 {offsets = [0, 3], sizes = [8, 1], strides = [1, 1]} : vector<8x4xf32> to vector<8x1xf32>
    %31 = vector.extract_strided_slice %26 {offsets = [0, 0], sizes = [8, 1], strides = [1, 1]} : vector<8x4xf32> to vector<8x1xf32>
    %32 = vector.extract_strided_slice %26 {offsets = [0, 1], sizes = [8, 1], strides = [1, 1]} : vector<8x4xf32> to vector<8x1xf32>
    %33 = vector.extract_strided_slice %26 {offsets = [0, 2], sizes = [8, 1], strides = [1, 1]} : vector<8x4xf32> to vector<8x1xf32>
    %34 = vector.extract_strided_slice %26 {offsets = [0, 3], sizes = [8, 1], strides = [1, 1]} : vector<8x4xf32> to vector<8x1xf32>
    %35 = vector.extract_strided_slice %21 {offsets = [0, 0], sizes = [1, 128], strides = [1, 1]} : vector<24x128xf32> to vector<1x128xf32>
    %36 = vector.extract_strided_slice %21 {offsets = [1, 0], sizes = [1, 128], strides = [1, 1]} : vector<24x128xf32> to vector<1x128xf32>
    %37 = vector.extract_strided_slice %21 {offsets = [2, 0], sizes = [1, 128], strides = [1, 1]} : vector<24x128xf32> to vector<1x128xf32>
    %38 = vector.extract_strided_slice %21 {offsets = [3, 0], sizes = [1, 128], strides = [1, 1]} : vector<24x128xf32> to vector<1x128xf32>
    %39 = vector.extract_strided_slice %21 {offsets = [4, 0], sizes = [1, 128], strides = [1, 1]} : vector<24x128xf32> to vector<1x128xf32>
    %40 = vector.extract_strided_slice %21 {offsets = [5, 0], sizes = [1, 128], strides = [1, 1]} : vector<24x128xf32> to vector<1x128xf32>
    %41 = vector.extract_strided_slice %21 {offsets = [6, 0], sizes = [1, 128], strides = [1, 1]} : vector<24x128xf32> to vector<1x128xf32>
    %42 = vector.extract_strided_slice %21 {offsets = [7, 0], sizes = [1, 128], strides = [1, 1]} : vector<24x128xf32> to vector<1x128xf32>
    %43 = vector.broadcast %27 : vector<8x1xf32> to vector<8x128xf32>
    %44 = vector.broadcast %35 : vector<1x128xf32> to vector<8x128xf32>
    %45 = arith.subf %43, %44 : vector<8x128xf32>
    %46 = math.absf %45 : vector<8x128xf32>
    %47 = vector.broadcast %28 : vector<8x1xf32> to vector<8x128xf32>
    %48 = vector.broadcast %36 : vector<1x128xf32> to vector<8x128xf32>
    %49 = arith.subf %47, %48 : vector<8x128xf32>
    %50 = math.absf %49 : vector<8x128xf32>
    %51 = arith.addf %46, %50 : vector<8x128xf32>
    %52 = vector.broadcast %29 : vector<8x1xf32> to vector<8x128xf32>
    %53 = vector.broadcast %37 : vector<1x128xf32> to vector<8x128xf32>
    %54 = arith.subf %52, %53 : vector<8x128xf32>
    %55 = math.absf %54 : vector<8x128xf32>
    %56 = arith.addf %51, %55 : vector<8x128xf32>
    %57 = vector.broadcast %30 : vector<8x1xf32> to vector<8x128xf32>
    %58 = vector.broadcast %38 : vector<1x128xf32> to vector<8x128xf32>
    %59 = arith.subf %57, %58 : vector<8x128xf32>
    %60 = math.absf %59 : vector<8x128xf32>
    %61 = arith.addf %56, %60 : vector<8x128xf32>
    %62 = vector.broadcast %31 : vector<8x1xf32> to vector<8x128xf32>
    %63 = vector.broadcast %39 : vector<1x128xf32> to vector<8x128xf32>
    %64 = arith.subf %62, %63 : vector<8x128xf32>
    %65 = math.absf %64 : vector<8x128xf32>
    %66 = vector.broadcast %32 : vector<8x1xf32> to vector<8x128xf32>
    %67 = vector.broadcast %40 : vector<1x128xf32> to vector<8x128xf32>
    %68 = arith.subf %66, %67 : vector<8x128xf32>
    %69 = math.absf %68 : vector<8x128xf32>
    %70 = arith.addf %65, %69 : vector<8x128xf32>
    %71 = vector.broadcast %33 : vector<8x1xf32> to vector<8x128xf32>
    %72 = vector.broadcast %41 : vector<1x128xf32> to vector<8x128xf32>
    %73 = arith.subf %71, %72 : vector<8x128xf32>
    %74 = math.absf %73 : vector<8x128xf32>
    %75 = arith.addf %70, %74 : vector<8x128xf32>
    %76 = vector.broadcast %34 : vector<8x1xf32> to vector<8x128xf32>
    %77 = vector.broadcast %42 : vector<1x128xf32> to vector<8x128xf32>
    %78 = arith.subf %76, %77 : vector<8x128xf32>
    %79 = math.absf %78 : vector<8x128xf32>
    %80 = arith.addf %75, %79 : vector<8x128xf32>
    %81 = vector.extract_strided_slice %21 {offsets = [18, 0], sizes = [1, 128], strides = [1, 1]} : vector<24x128xf32> to vector<1x128xf32>
    %82 = vector.broadcast %81 : vector<1x128xf32> to vector<8x128xf32>
    %83 = arith.mulf %80, %82 : vector<8x128xf32>
    %84 = arith.maximumf %61, %83 : vector<8x128xf32>
    %cst_11 = arith.constant 1.000000e+00 : f32
    %85 = vector.broadcast %cst_11 : f32 to vector<8x128xf32>
    %86 = arith.mulf %85, %84 : vector<8x128xf32>
    %87 = arith.addf %24, %86 : vector<8x128xf32>
    %88 = vector.extract_strided_slice %21 {offsets = [8, 0], sizes = [1, 128], strides = [1, 1]} : vector<24x128xf32> to vector<1x128xf32>
    %89 = vector.extract_strided_slice %21 {offsets = [9, 0], sizes = [1, 128], strides = [1, 1]} : vector<24x128xf32> to vector<1x128xf32>
    %90 = vector.extract_strided_slice %21 {offsets = [10, 0], sizes = [1, 128], strides = [1, 1]} : vector<24x128xf32> to vector<1x128xf32>
    %91 = vector.extract_strided_slice %21 {offsets = [11, 0], sizes = [1, 128], strides = [1, 1]} : vector<24x128xf32> to vector<1x128xf32>
    %92 = vector.extract_strided_slice %21 {offsets = [12, 0], sizes = [1, 128], strides = [1, 1]} : vector<24x128xf32> to vector<1x128xf32>
    %93 = vector.extract_strided_slice %21 {offsets = [13, 0], sizes = [1, 128], strides = [1, 1]} : vector<24x128xf32> to vector<1x128xf32>
    %94 = vector.extract_strided_slice %21 {offsets = [14, 0], sizes = [1, 128], strides = [1, 1]} : vector<24x128xf32> to vector<1x128xf32>
    %95 = vector.extract_strided_slice %21 {offsets = [15, 0], sizes = [1, 128], strides = [1, 1]} : vector<24x128xf32> to vector<1x128xf32>
    %cst_12 = arith.constant 5.000000e-01 : f32
    %96 = vector.broadcast %cst_12 : f32 to vector<8x1xf32>
    %97 = arith.mulf %96, %29 : vector<8x1xf32>
    %cst_13 = arith.constant 5.000000e-01 : f32
    %98 = vector.broadcast %cst_13 : f32 to vector<8x1xf32>
    %99 = arith.mulf %98, %30 : vector<8x1xf32>
    %100 = arith.subf %27, %97 : vector<8x1xf32>
    %101 = arith.subf %28, %99 : vector<8x1xf32>
    %102 = arith.addf %27, %97 : vector<8x1xf32>
    %103 = arith.addf %28, %99 : vector<8x1xf32>
    %104 = vector.extract_strided_slice %21 {offsets = [16, 0], sizes = [1, 128], strides = [1, 1]} : vector<24x128xf32> to vector<1x128xf32>
    %105 = arith.subf %102, %100 : vector<8x1xf32>
    %106 = arith.subf %103, %101 : vector<8x1xf32>
    %107 = arith.mulf %105, %106 : vector<8x1xf32>
    %108 = vector.broadcast %102 : vector<8x1xf32> to vector<8x128xf32>
    %109 = vector.broadcast %90 : vector<1x128xf32> to vector<8x128xf32>
    %110 = arith.minimumf %108, %109 : vector<8x128xf32>
    %111 = vector.broadcast %100 : vector<8x1xf32> to vector<8x128xf32>
    %112 = vector.broadcast %88 : vector<1x128xf32> to vector<8x128xf32>
    %113 = arith.maximumf %111, %112 : vector<8x128xf32>
    %114 = arith.subf %110, %113 : vector<8x128xf32>
    %cst_14 = arith.constant 0.000000e+00 : f32
    %115 = vector.broadcast %cst_14 : f32 to vector<8x128xf32>
    %116 = arith.maximumf %114, %115 : vector<8x128xf32>
    %117 = vector.broadcast %103 : vector<8x1xf32> to vector<8x128xf32>
    %118 = vector.broadcast %91 : vector<1x128xf32> to vector<8x128xf32>
    %119 = arith.minimumf %117, %118 : vector<8x128xf32>
    %120 = vector.broadcast %101 : vector<8x1xf32> to vector<8x128xf32>
    %121 = vector.broadcast %89 : vector<1x128xf32> to vector<8x128xf32>
    %122 = arith.maximumf %120, %121 : vector<8x128xf32>
    %123 = arith.subf %119, %122 : vector<8x128xf32>
    %cst_15 = arith.constant 0.000000e+00 : f32
    %124 = vector.broadcast %cst_15 : f32 to vector<8x128xf32>
    %125 = arith.maximumf %123, %124 : vector<8x128xf32>
    %126 = arith.mulf %116, %125 : vector<8x128xf32>
    %127 = vector.broadcast %107 : vector<8x1xf32> to vector<8x128xf32>
    %128 = vector.broadcast %104 : vector<1x128xf32> to vector<8x128xf32>
    %129 = arith.addf %127, %128 : vector<8x128xf32>
    %130 = arith.subf %129, %126 : vector<8x128xf32>
    %131 = vector.broadcast %102 : vector<8x1xf32> to vector<8x128xf32>
    %132 = vector.broadcast %90 : vector<1x128xf32> to vector<8x128xf32>
    %133 = arith.maximumf %131, %132 : vector<8x128xf32>
    %134 = vector.broadcast %100 : vector<8x1xf32> to vector<8x128xf32>
    %135 = vector.broadcast %88 : vector<1x128xf32> to vector<8x128xf32>
    %136 = arith.minimumf %134, %135 : vector<8x128xf32>
    %137 = arith.subf %133, %136 : vector<8x128xf32>
    %cst_16 = arith.constant 0.000000e+00 : f32
    %138 = vector.broadcast %cst_16 : f32 to vector<8x128xf32>
    %139 = arith.maximumf %137, %138 : vector<8x128xf32>
    %140 = vector.broadcast %103 : vector<8x1xf32> to vector<8x128xf32>
    %141 = vector.broadcast %91 : vector<1x128xf32> to vector<8x128xf32>
    %142 = arith.maximumf %140, %141 : vector<8x128xf32>
    %143 = vector.broadcast %101 : vector<8x1xf32> to vector<8x128xf32>
    %144 = vector.broadcast %89 : vector<1x128xf32> to vector<8x128xf32>
    %145 = arith.minimumf %143, %144 : vector<8x128xf32>
    %146 = arith.subf %142, %145 : vector<8x128xf32>
    %cst_17 = arith.constant 0.000000e+00 : f32
    %147 = vector.broadcast %cst_17 : f32 to vector<8x128xf32>
    %148 = arith.maximumf %146, %147 : vector<8x128xf32>
    %149 = arith.mulf %139, %148 : vector<8x128xf32>
    %150 = arith.divf %126, %130 : vector<8x128xf32>
    %151 = arith.subf %149, %130 : vector<8x128xf32>
    %152 = arith.divf %151, %149 : vector<8x128xf32>
    %153 = arith.subf %150, %152 : vector<8x128xf32>
    %cst_18 = arith.constant 0.000000e+00 : f32
    %154 = vector.broadcast %cst_18 : f32 to vector<8x128xf32>
    %155 = arith.subf %154, %153 : vector<8x128xf32>
    %cst_19 = arith.constant 5.000000e-01 : f32
    %156 = vector.broadcast %cst_19 : f32 to vector<8x1xf32>
    %157 = arith.mulf %156, %33 : vector<8x1xf32>
    %cst_20 = arith.constant 5.000000e-01 : f32
    %158 = vector.broadcast %cst_20 : f32 to vector<8x1xf32>
    %159 = arith.mulf %158, %34 : vector<8x1xf32>
    %160 = arith.subf %31, %157 : vector<8x1xf32>
    %161 = arith.subf %32, %159 : vector<8x1xf32>
    %162 = arith.addf %31, %157 : vector<8x1xf32>
    %163 = arith.addf %32, %159 : vector<8x1xf32>
    %164 = vector.extract_strided_slice %21 {offsets = [17, 0], sizes = [1, 128], strides = [1, 1]} : vector<24x128xf32> to vector<1x128xf32>
    %165 = arith.subf %162, %160 : vector<8x1xf32>
    %166 = arith.subf %163, %161 : vector<8x1xf32>
    %167 = arith.mulf %165, %166 : vector<8x1xf32>
    %168 = vector.broadcast %162 : vector<8x1xf32> to vector<8x128xf32>
    %169 = vector.broadcast %94 : vector<1x128xf32> to vector<8x128xf32>
    %170 = arith.minimumf %168, %169 : vector<8x128xf32>
    %171 = vector.broadcast %160 : vector<8x1xf32> to vector<8x128xf32>
    %172 = vector.broadcast %92 : vector<1x128xf32> to vector<8x128xf32>
    %173 = arith.maximumf %171, %172 : vector<8x128xf32>
    %174 = arith.subf %170, %173 : vector<8x128xf32>
    %cst_21 = arith.constant 0.000000e+00 : f32
    %175 = vector.broadcast %cst_21 : f32 to vector<8x128xf32>
    %176 = arith.maximumf %174, %175 : vector<8x128xf32>
    %177 = vector.broadcast %163 : vector<8x1xf32> to vector<8x128xf32>
    %178 = vector.broadcast %95 : vector<1x128xf32> to vector<8x128xf32>
    %179 = arith.minimumf %177, %178 : vector<8x128xf32>
    %180 = vector.broadcast %161 : vector<8x1xf32> to vector<8x128xf32>
    %181 = vector.broadcast %93 : vector<1x128xf32> to vector<8x128xf32>
    %182 = arith.maximumf %180, %181 : vector<8x128xf32>
    %183 = arith.subf %179, %182 : vector<8x128xf32>
    %cst_22 = arith.constant 0.000000e+00 : f32
    %184 = vector.broadcast %cst_22 : f32 to vector<8x128xf32>
    %185 = arith.maximumf %183, %184 : vector<8x128xf32>
    %186 = arith.mulf %176, %185 : vector<8x128xf32>
    %187 = vector.broadcast %167 : vector<8x1xf32> to vector<8x128xf32>
    %188 = vector.broadcast %164 : vector<1x128xf32> to vector<8x128xf32>
    %189 = arith.addf %187, %188 : vector<8x128xf32>
    %190 = arith.subf %189, %186 : vector<8x128xf32>
    %191 = vector.broadcast %162 : vector<8x1xf32> to vector<8x128xf32>
    %192 = vector.broadcast %94 : vector<1x128xf32> to vector<8x128xf32>
    %193 = arith.maximumf %191, %192 : vector<8x128xf32>
    %194 = vector.broadcast %160 : vector<8x1xf32> to vector<8x128xf32>
    %195 = vector.broadcast %92 : vector<1x128xf32> to vector<8x128xf32>
    %196 = arith.minimumf %194, %195 : vector<8x128xf32>
    %197 = arith.subf %193, %196 : vector<8x128xf32>
    %cst_23 = arith.constant 0.000000e+00 : f32
    %198 = vector.broadcast %cst_23 : f32 to vector<8x128xf32>
    %199 = arith.maximumf %197, %198 : vector<8x128xf32>
    %200 = vector.broadcast %163 : vector<8x1xf32> to vector<8x128xf32>
    %201 = vector.broadcast %95 : vector<1x128xf32> to vector<8x128xf32>
    %202 = arith.maximumf %200, %201 : vector<8x128xf32>
    %203 = vector.broadcast %161 : vector<8x1xf32> to vector<8x128xf32>
    %204 = vector.broadcast %93 : vector<1x128xf32> to vector<8x128xf32>
    %205 = arith.minimumf %203, %204 : vector<8x128xf32>
    %206 = arith.subf %202, %205 : vector<8x128xf32>
    %cst_24 = arith.constant 0.000000e+00 : f32
    %207 = vector.broadcast %cst_24 : f32 to vector<8x128xf32>
    %208 = arith.maximumf %206, %207 : vector<8x128xf32>
    %209 = arith.mulf %199, %208 : vector<8x128xf32>
    %210 = arith.divf %186, %190 : vector<8x128xf32>
    %211 = arith.subf %209, %190 : vector<8x128xf32>
    %212 = arith.divf %211, %209 : vector<8x128xf32>
    %213 = arith.subf %210, %212 : vector<8x128xf32>
    %cst_25 = arith.constant 0.000000e+00 : f32
    %214 = vector.broadcast %cst_25 : f32 to vector<8x128xf32>
    %215 = arith.subf %214, %213 : vector<8x128xf32>
    %216 = vector.extract_strided_slice %21 {offsets = [19, 0], sizes = [1, 128], strides = [1, 1]} : vector<24x128xf32> to vector<1x128xf32>
    %217 = vector.broadcast %216 : vector<1x128xf32> to vector<8x128xf32>
    %218 = arith.mulf %155, %217 : vector<8x128xf32>
    %219 = arith.addf %215, %218 : vector<8x128xf32>
    %220 = arith.maximumf %155, %219 : vector<8x128xf32>
    %cst_26 = arith.constant 1.000000e+00 : f32
    %221 = vector.broadcast %cst_26 : f32 to vector<8x128xf32>
    %222 = arith.mulf %221, %220 : vector<8x128xf32>
    %223 = arith.addf %87, %222 : vector<8x128xf32>
    %c0_27 = arith.constant 0 : index
    %c0_28 = arith.constant 0 : index
    %224 = vector.load %arg4[%c0_27, %c0_28] : memref<8x128xf32, #tpu.memory_space<vmem>>, vector<8x128xf32>
    tpu.vector_store %arg4[%c0_27, %c0_28], %223 {strides = array<i32>} : memref<8x128xf32, #tpu.memory_space<vmem>>, vector<8x128xf32>,
    return
  }
  func.func @transform_0(%arg0: i32) -> (i32, i32) {
    %c0_i32 = arith.constant 0 : i32
    %c0_i32_0 = arith.constant 0 : i32
    return %arg0, %c0_i32 : i32, i32
  }
  func.func @transform_1(%arg0: i32) -> (i32, i32) {
    %c0_i32 = arith.constant 0 : i32
    %c0_i32_0 = arith.constant 0 : i32
    %c0_i32_1 = arith.constant 0 : i32
    return %c0_i32, %c0_i32_0 : i32, i32
  }
  func.func @transform_2(%arg0: i32) -> (i32, i32) {
    %c0_i32 = arith.constant 0 : i32
    %c0_i32_0 = arith.constant 0 : i32
    %c0_i32_1 = arith.constant 0 : i32
    return %c0_i32, %c0_i32_0 : i32, i32
  }
  func.func @transform_3(%arg0: i32) -> (i32, i32) {
    %c0_i32 = arith.constant 0 : i32
    %c0_i32_0 = arith.constant 0 : i32
    return %arg0, %c0_i32 : i32, i32
  }
}

</mosaic_0001>

<bundles_post_ra>
// kernel: tpu_custom_call.1
= control target key start
LH: loop header
LB: loop body
LE: loop exit
PB: predicated region body
PF: predicated region fallthrough
CT: control target
= control target key end

     0   :  { %8 = vsyncpa [#allocation3], 0  ;;  %s1281_s0 = inlined_call_operand.hbm [shape: f32[16,128], index: 0, kind: input, shape index: {}]   ;;  %s1282_s1 = inlined_call_operand.hbm [shape: bf16[20,128], index: 1, kind: input, shape index: {}]   ;;  %s1283_s2 = inlined_call_operand.hbm [shape: f32[24,128], index: 2, kind: input, shape index: {}]   ;;  %s1284_s3 = inlined_call_operand.hbm [shape: f32[16,128], index: 3, kind: output, shape index: {}]  }
   0x1   :  { %10 = vsyncpa [#allocation3 + $0x1], 0 }
   0x2   :  { %11 = vsyncpa [#allocation6], 0 }
   0x3   :  { %12 = vsyncpa [#allocation4], 0 }
   0x4   :  { %14 = vsyncpa [#allocation4 + $0x1], 0  ;;  %s980_s12 = smov 0   ;;  %s982_s13 = smov 0  }
   0x5   :  { %s984_s14 = smov 0   ;;  %s986_s15 = smov 0  }
   0x6 LB: > { %s130_s18 = sshll.u32 %s1282_s1, 4  ;;  %s1004_s19 = sadd.s32 4294967295, %s942_s15   ;;  %s942_s15 = sphi %s986_s15, %s1303_s15   ;;  %s938_s14 = sphi %s984_s14, %s1302_s14   ;;  %s934_s13 = sphi %s982_s13, %s1301_s13   ;;  %s930_s12 = sphi %s980_s12, %s1300_s12   ;;  %s131_s18 = int_to_ptr.hbm [resolvable:$true] %s130_s18 }
   0x7   : > { %p644_p0 = scmp.ge.s32.totalorder %s942_s15, 1  ;;  %p41_p1 = scmp.eq.s32.totalorder %s1004_s19, 0 }
   0x8   : > { %p119_p2 = scmp.lt.s32.totalorder %s942_s15, 3  ;;  %s944_s21 = smov [#allocation5]  }
   0x9   : > { %s132_s22 = sshll.u32 %s944_s21, 4  ;;  %s144_s25 = sshll.u32 %s1283_s2, 4  ;;  %s133_s22 = int_to_ptr.vmem [resolvable:$true] %s132_s22  ;;  %s145_s25 = int_to_ptr.hbm [resolvable:$true] %s144_s25 }
   0xa   : > { %p1009_p3 = pnand %p644_p0, %p119_p2  ;;  %s945_s26 = smov [#allocation7]  }
   0xb   : > { %s146_s27 = sshll.u32 %s945_s26, 4  ;;  %s946_s28 = smov 64   ;;  %s147_s27 = int_to_ptr.vmem [resolvable:$true] %s146_s27 }
   0xc   : > { %p678_p4 = pneg %p1009_p3  ;;  %s947_s29 = smov 4  }
   0xd   : > { %s948_s30 = smov 128   ;;  %s949_s4 = smov 8  }
   0xe   : > { %p679_p6 = pnand %p678_p4, %p41_p1  ;;  %s643_s5 = sadd.s32 4294967294, %s942_s15  }
   0xf   : > { %s1023_s6 = sadd.s32 1, %s942_s15   ;;  %s27_s8 = sadd.s32 1, %s938_s14 }
  0x10   : > { %681 = dma.hbm_to_vmem [thread:$0]  (!%p679_p6), %s131_s18, 192, %s133_s22, [#allocation6], %s946_s28, %s946_s28, %s947_s29  }
  0x11   : > { %684 = dma.hbm_to_vmem [thread:$0]  (!%p679_p6), %s145_s25, 384, %s147_s27, [#allocation6], %s948_s30, %s948_s30, %s949_s4  }
  0x12   : > { %s24_s7 = ssub.s32 %s942_s15, %s1023_s6  ;;  %p34_p8 = scmp.ne.s32.totalorder %s938_s14, %s934_s13 }
  0x13   : > { %p25_p7 = scmp.eq.s32.totalorder %s24_s7, 0  ;;  %p35_p9 = scmp.eq.s32.totalorder %s942_s15, 0 }
  0x14   : > { %p40_p10 = scmp.ne.s32.totalorder %s934_s13, %s930_s12  ;;  %p106_p13 = scmp.eq.s32.totalorder %s1004_s19, 1 }
  0x15   : > { %s1034_s9 = scalar_select %p25_p7, %s938_s14, %s27_s8  }
  0x16   : > { %p1036_p11 = por %p35_p9, %p34_p8  ;;  %p1042_p12 = por %p41_p1, %p40_p10 }
  0x17   : > { %p112_p0 = scmp.eq.s32.totalorder %s643_s5, 1  ;;  %p695_p2 = scmp.lt.s32.totalorder %s942_s15, 2 }
  0x18   : > { %s160_s16 = sand.u32 1, %s938_s14   ;;  %p1049_p4 = por %p106_p13, %p34_p8 }
  0x19   : > { %p1053_p6 = por %p112_p0, %p40_p10  ;;  %s648_s21 = sshll.u32 %s160_s16, 3 }
  0x1a   : > { %s649_s22 = sshll.u32 %s942_s15, 3  ;;  %s164_s26 = scalar_lea.vmem [#allocation2], %s648_s21 }
  0x1b   : > { %s168_s25 = scalar_lea.hbm %s1281_s0, %s649_s22  ;;  %s172_s27 = sshll.u32 %s164_s26, 4  ;;  %s173_s27 = int_to_ptr.vmem [resolvable:$true] %s172_s27 }
  0x1c   : > { %s170_s28 = sshll.u32 %s168_s25, 4  ;;  %p1063_p7 = pnand %p695_p2, %p1036_p11  ;;  %s171_s28 = int_to_ptr.hbm [resolvable:$true] %s170_s28 }
  0x1d   : > { %s161_s30 = scalar_lea.sflag [#allocation3], %s160_s16  ;;  %s842_s4 = sshra.s32 %s171_s28, 4  ;;  %s843_s4 = int_to_ptr.hbm [resolvable:$true] %s842_s4 }
  0x1e   : > { %s844_s5 = scalar_lea.hbm %s843_s4, 8  ;;  %p846_p9 = pneg %p1063_p7 }
  0x1f   : > { %p845_p8 = scmp.ne.s32.totalorder %s843_s4, %s844_s5  ;;  %s849_s21 = scalar_lea.hbm %s1281_s0, 16 }
  0x20   : > { %p850_p11 = scmp.lt.s32.totalorder %s843_s4, %s1281_s0  ;;  %p851_p0 = scmp.lt.s32.totalorder %s849_s21, %s844_s5 }
  0x21   : > { %p847_p10 = pnand %p846_p9, %p845_p8 }
  0x22   : > { %p852_p2 = por %p851_p0, %p850_p11 }
  0x23   : > { %p848_p13 = pneg %p847_p10 }
  0x25   : > { %p853_p5 = pnand %p852_p2, %p848_p13 }
  0x27   : > { %856 = shalt.err (!%p853_p5)
}
  0x28   : > { %688 = dma.hbm_to_vmem [thread:$0]  (!%p1063_p7), %s171_s28, 128, %s173_s27, %s161_s30  }
  0x29   : > { %181 = sbr.rel (%p1009_p3) target bundleno = 443 (0x1bb), region = 32  ;;  %s1080_s16 = sand.u32 (!%p1009_p3), 1, %s934_s13  }
  0x2a   : > { %s651_s23 = sshll.u32 (!%p1009_p3), %s1080_s16, 3  ;;  %s184_s24 = scalar_lea.sflag (!%p1009_p3), [#allocation3], %s1080_s16 }
  0x2b   : > { %s187_s25 = scalar_lea.vmem (!%p1009_p3), [#allocation2], %s651_s23 }
  0x2e   : > { %917 = dma.done.wait (%p1042_p12), %s184_s24, 128  }
  0x2f   : > { %919 = vsyncadd (%p1042_p12), %s184_s24, 4294967168 }
  0x30   : > { %921 = dma.done.wait (%p41_p1), [#allocation6], 576  }
  0x31   : > { %923 = vsyncadd (%p41_p1), [#allocation6], 4294966720  ;;  %v950_v0 = vmov 20   ;;  %vm223_vm0 = vcmask 97280   ;;  %v1095_v1 = vld [vmem:[%s187_s25] sm:$0xff]  ;;  %s951_s20 = smov 126  }
  0x32   : > { %747 = vset.pattern.permute.xlu2 %v950_v0  ;;  %v224_v2 = vsel %vm223_vm0, %v1095_v1, -inf  ;;  %v360_v3 = vmul.f32 0.5, %v1095_v1  ;;  %v952_v4 = vmov 21   ;;  %v953_v5 = vmov 24   ;;  %s956_s11 = smov 127   ;;  %v1112_v17 = vld [vmem:[#allocation7] sm:$0xff] }
  0x33   : > { %295 = vperm.xlu2 %747, %v1095_v1   ;;  %225 = vmax.xlane.f32.xlu0 %v224_v2  ;;  %v954_v6 = vmov 23   ;;  %v955_v9 = vmov 22   ;;  %v298_v19 = vperm.slane %v1112_v17, 0  ;;  %v957_v20 = vmov 25   ;;  %v258_v29 = vld [vmem:[#allocation5 + $0x8] sm:$0x3] }
  0x34   : > { %362 = vrot.lane.b32.xlu1 %v360_v3, %s951_s20  ;;  %749 = vset.pattern.permute.xlu0 %v955_v9  ;;  %v305_v22 = vperm.slane %v1112_v17, 1  ;;  %v655_v28 = vmul.f32 -1.442695, %v1095_v1  ;;  %v268_v30 = vunpack.c.l.b16 %v258_v29  ;;  %vm276_vm1 = vcmask 1041408   ;;  %v665_v35 = vld [vmem:[#allocation5] sm:$0xff]  ;;  %s662_s26 = sshll.u32 %s1004_s19, 3 }
  0x35   : > { %750 = vset.pattern.permute.xlu1 %v954_v6  ;;  %v958_v46 = vmov 26   ;;  %v959_v47 = vmov 27   ;;  %vm272_vm6 = vcmask 162816   ;;  %s549_s29 = scalar_lea.hbm %s1284_s3, %s662_s26  ;;  %s220_s30 = scalar_lea.vmem [#allocation8], %s651_s23 }
  0x36   : > { %v270_v31 = vpack.c.b16 %v268_v30, %v268_v30  ;;  %s551_s19 = sshll.u32 %s220_s30, 4  ;;  %s553_s4 = sshll.u32 %s549_s29, 4  ;;  %s552_s19 = int_to_ptr.vmem [resolvable:$true] %s551_s19  ;;  %s554_s4 = int_to_ptr.hbm [resolvable:$true] %s553_s4 }
  0x37   : > { %s539_s5 = scalar_lea.sflag [#allocation4], %s1080_s16  ;;  %s886_s7 = sshra.s32 %s554_s4, 4  ;;  %s887_s7 = int_to_ptr.hbm [resolvable:$true] %s886_s7 }
  0x38   : > { %v278_v33 = vsel %vm276_vm1, %v270_v31, 0  ;;  %s888_s8 = scalar_lea.hbm %s887_s7, 8  ;;  %s892_s10 = scalar_lea.hbm %s1284_s3, 16 }
  0x39   : > { %286 = vmatpush.bf16.msra.mxu0 %v278_v33  ;;  %p889_p1 = scmp.ne.s32.totalorder %s887_s7, %s888_s8  ;;  %p893_p12 = scmp.lt.s32.totalorder %s887_s7, %s1284_s3 }
  0x3a   : > { %p894_p7 = scmp.lt.s32.totalorder %s892_s10, %s888_s8 }
  0x3b   : > { %748 = vset.pattern.permute.xlu2 %v952_v4  ;;  %p890_p3 = pnand %p889_p1, %p1049_p4 }
  0x3c   : > { %302 = vperm.xlu2 %748, %v1095_v1   ;;  %p895_p8 = por %p894_p7, %p893_p12 }
  0x3d   : > { %287 = vmatpush.bf16.msra.mxu0 %v665_v35  ;;  %p891_p5 = pneg %p890_p3 }
  0x3f   : > { %p896_p9 = pnand %p895_p8, %p891_p5 }
  0x44   : > { %751 = vset.pattern.permute.xlu2 %v953_v5 }
  0x45   : > { %326 = vperm.xlu2 %751, %v1095_v1  }
  0x4d   : > { %753 = vset.pattern.permute.xlu2 %v950_v0 }
  0x8d   : > { %v296_v18 = vpop.permute.xlu2 %295 }
  0x8e   : > { %v299_v21 = vsub.f32 %v296_v18, %v298_v19 }
  0x90   : > { %v300_v24 = vand.u32 2147483647, %v299_v21 }
  0x96   : > { %v303_v23 = vpop.permute.xlu2 %302 }
  0x97   : > { %v306_v25 = vsub.f32 %v303_v23, %v305_v22 }
  0x99   : > { %v307_v26 = vand.u32 2147483647, %v306_v25 }
  0x9b   : > { %v1118_v27 = vadd.f32 %v307_v26, %v300_v24 }
  0x9f   : > { %v1129_v56 = vpop.permute.xlu2 %326 }
  0xa6   : > { %v363_v7 = vpop.permute.xlu1 %362  ;;  %v226_v8 = vpop.xlane.xlu0 %225 }
  0xa7   : > { %v365_v10 = vsub.f32 %v1095_v1, %v363_v7  ;;  %v366_v11 = vadd.f32 %v363_v7, %v1095_v1  ;;  %v227_v12 = vsub.f32 %v1095_v1, %v226_v8 }
  0xa9   : > { %v228_v13 = vmul.f32 1.442695, %v227_v12  ;;  %375 = vperm.xlu2 %753, %v366_v11   ;;  %v367_v14 = vsub.f32 %v366_v11, %v365_v10 }
  0xab   : > { %766 = vpow2.f32 %v228_v13  ;;  %369 = vrot.lane.b32.xlu1 %v367_v14, %s956_s11 }
  0xac   : > { %768 = vpow2.f32 %v655_v28 }
  0xb1   : > { %v1107_v15 = vpop.eup %766  ;;  %755 = vset.pattern.permute.xlu2 %v952_v4 }
  0xb2   : > { %390 = vperm.xlu2 %755, %v366_v11   ;;  %v230_v16 = vsel %vm223_vm0, %v1107_v15, 0.0  ;;  %v769_v32 = vpop.eup %768 }
  0xb3   : > { %318 = vperm.xlu1 %750, %v1095_v1   ;;  %231 = vadd.xlane.f32.xlu0 %v230_v16  ;;  %v238_v34 = vadd.f32 1.0, %v769_v32 }
  0xb5   : > { %770 = vrcp.f32 %v238_v34  ;;  %vm244_vm2 = vweird.f32 %v238_v34  ;;  %v250_v42 = vand.u32 2147483648, %v238_v34  ;;  %v248_v45 = vand.u32 2147483647, %v238_v34 }
  0xb7   : > { %v251_v48 = vor.u32 1.1754944e-38, %v250_v42  ;;  %vm249_vm5 = vcmp.eq.f32.partialorder %v248_v45, 8.507059e+37 }
  0xba   : > { %757 = vset.pattern.permute.xlu2 %v953_v5 }
  0xbb   : > { %455 = vperm.xlu2 %757, %v366_v11   ;;  %752 = vset.pattern.permute.xlu1 %v957_v20  ;;  %v771_v36 = vpop.eup %770 }
  0xbc   : > { %333 = vperm.xlu1 %752, %v1095_v1   ;;  %v240_v37 = vmul.f32 %v771_v36, %v238_v34  ;;  %vm245_vm3 = vweird.f32 %v771_v36 }
  0xbd   : > { %vm246_vm4 = vmor %vm244_vm2, %vm245_vm3 }
  0xbe   : > { %v241_v40 = vsub.f32 1.0, %v240_v37 }
  0xc0   : > { %v242_v41 = vmul.f32 %v771_v36, %v241_v40 }
  0xc2   : > { %v243_v44 = vadd.f32 %v771_v36, %v242_v41 }
  0xc3   : > { %759 = vset.pattern.permute.xlu2 %v957_v20 }
  0xc4   : > { %469 = vperm.xlu2 %759, %v366_v11   ;;  %754 = vset.pattern.permute.xlu1 %v950_v0  ;;  %v247_v49 = vsel %vm246_vm4, %v771_v36, %v243_v44 }
  0xc5   : > { %382 = vperm.xlu1 %754, %v365_v10   ;;  %v252_v51 = vsel %vm249_vm5, %v251_v48, %v247_v49 }
  0xc7   : > { %310 = vperm.xlu0 %749, %v1095_v1  }
  0xcc   : > { %762 = vset.pattern.permute.xlu2 %v953_v5 }
  0xcd   : > { %756 = vset.pattern.permute.xlu1 %v952_v4 }
  0xce   : > { %396 = vperm.xlu1 %756, %v365_v10  }
  0xcf   : > { %760 = vset.pattern.permute.xlu0 %v957_v20 }
  0xd0   : > { %475 = vperm.xlu0 %760, %v365_v10  }
  0xd6   : > { %758 = vset.pattern.permute.xlu1 %v953_v5 }
  0xd7   : > { %461 = vperm.xlu1 %758, %v365_v10  }
  0xd8   : > { %765 = vset.pattern.permute.xlu0 %v953_v5 }
  0xdf   : > { %761 = vset.pattern.permute.xlu1 %v950_v0  ;;  %v260_v0 = vld [vmem:[#allocation7 + $0x8] sm:$0xff] }
  0xe0   : > { %v458_v3 = vperm.slane %v260_v0, 6  ;;  %v478_v4 = vperm.slane %v260_v0, 5  ;;  %v472_v7 = vperm.slane %v260_v0, 7  ;;  %v399_v8 = vperm.slane %v260_v0, 1 }
  0xe1   : > { %v393_v10 = vperm.slane %v260_v0, 3  ;;  %v385_v12 = vperm.slane %v260_v0, 0 }
 0x103   : > { %v376_v58 = vpop.permute.xlu2 %375 }
 0x10c   : > { %v391_v60 = vpop.permute.xlu2 %390 }
 0x10d   : > { %v416_v21 = vmax.f32 %v391_v60, %v393_v10 }
 0x115   : > { %v456_v62 = vpop.permute.xlu2 %455 }
 0x116   : > { %v459_v11 = vmin.f32 %v456_v62, %v458_v3  ;;  %v490_v25 = vmax.f32 %v456_v62, %v458_v3 }
 0x11d   : > { %v370_v38 = vpop.permute.xlu1 %369 }
 0x11e   : > { %v372_v39 = vmul.f32 %v370_v38, %v367_v14  ;;  %v470_v5 = vpop.permute.xlu2 %469  ;;  %v1135_v14 = vld [vmem:[#allocation7 + $0x10] sm:$0xff] }
 0x11f   : > { %v473_v16 = vmin.f32 %v470_v5, %v472_v7  ;;  %v487_v24 = vperm.slane %v1135_v14, 1  ;;  %v494_v32 = vmax.f32 %v470_v5, %v472_v7 }
 0x120   : > { %484 = vperm.xlu2 %762, %v372_v39   ;;  %406 = vperm.xlu1 %761, %v372_v39  }
 0x125   : > { %v1127_v55 = vpop.permute.xlu1 %318 }
 0x126   : > { %v232_v43 = vpop.xlane.xlu0 %231 }
 0x127   : > { %772 = vrcp.f32 %v232_v43 }
 0x128   : > { %763 = vset.pattern.permute.xlu1 %v958_v46  ;;  %764 = vset.pattern.permute.xlu2 %v959_v47  ;;  %v394_v47 = vmin.f32 %v391_v60, %v393_v10 }
 0x129   : > { %341 = vperm.xlu1 %763, %v1095_v1   ;;  %349 = vperm.xlu2 %764, %v1095_v1   ;;  %v464_v1 = vperm.slane %v260_v0, 4 }
 0x12d   : > { %v773_v50 = vpop.eup %772 }
 0x12e   : > { %v234_v52 = vmul.f32 %v773_v50, %v1107_v15  ;;  %v1131_v57 = vpop.permute.xlu1 %333  ;;  %v378_v15 = vperm.slane %v260_v0, 2  ;;  %v409_v0 = vperm.slane %v1135_v14, 0 }
 0x130   : > { %v254_v53 = vsel %vm223_vm0, %v234_v52, %v252_v51  ;;  %v412_v29 = vmax.f32 %v376_v58, %v378_v15  ;;  %v379_v49 = vmin.f32 %v376_v58, %v378_v15 }
 0x131   : > { %v255_v54 = vpack.c.bf16 %v254_v53, %v254_v53  ;;  %v329_v53 = vperm.slane %v1112_v17, 4 }
 0x133   : > { %660 = vmatmul.msk.bf16.vlgmr.msra.gmra.mxu0 %vm272_vm6, %v255_v54  ;;  %v336_v54 = vperm.slane %v1112_v17, 5  ;;  %v330_v58 = vsub.f32 %v1129_v56, %v329_v53 }
 0x135   : > { %v331_v10 = vand.u32 2147483647, %v330_v58 }
 0x137   : > { %v383_v59 = vpop.permute.xlu1 %382 }
 0x138   : > { %v413_v22 = vmin.f32 %v383_v59, %v385_v12  ;;  %v386_v48 = vmax.f32 %v383_v59, %v385_v12 }
 0x139   : > { %v1133_v63 = vpop.permute.xlu0 %310 }
 0x13a   : > { %v414_v34 = vsub.f32 %v412_v29, %v413_v22  ;;  %v387_v52 = vsub.f32 %v379_v49, %v386_v48 }
 0x13c   : > { %v415_v41 = vmax.f32 %v414_v34, 0.0 }
 0x140   : > { %v397_v61 = vpop.permute.xlu1 %396 }
 0x141   : > { %v417_v18 = vmin.f32 %v397_v61, %v399_v8  ;;  %v400_v46 = vmax.f32 %v397_v61, %v399_v8 }
 0x142   : > { %v476_v6 = vpop.permute.xlu0 %475 }
 0x143   : > { %v479_v13 = vmax.f32 %v476_v6, %v478_v4  ;;  %v495_v26 = vmin.f32 %v476_v6, %v478_v4  ;;  %v418_v30 = vsub.f32 %v416_v21, %v417_v18  ;;  %v401_v50 = vsub.f32 %v394_v47, %v400_v46 }
 0x145   : > { %v480_v23 = vsub.f32 %v473_v16, %v479_v13  ;;  %v496_v37 = vsub.f32 %v494_v32, %v495_v26  ;;  %v419_v38 = vmax.f32 %v418_v30, 0.0  ;;  %v402_v61 = vmax.f32 %v401_v50, 0.0 }
 0x146   : > { %v313_v13 = vperm.slane %v1112_v17, 2  ;;  %v344_v16 = vperm.slane %v1112_v17, 6  ;;  %v352_v30 = vperm.slane %v1112_v17, 7 }
 0x147   : > { %v481_v35 = vmax.f32 %v480_v23, 0.0  ;;  %v497_v43 = vmax.f32 %v496_v37, 0.0  ;;  %v1143_v44 = vmul.f32 %v419_v38, %v415_v41 }
 0x149   : > { %v462_v2 = vpop.permute.xlu1 %461  ;;  %v446_v18 = vand.u32 2147483647, %v1143_v44  ;;  %vm442_vm8 = vweird.f32 %v1143_v44 }
 0x14a   : > { %v465_v9 = vmax.f32 %v462_v2, %v464_v1  ;;  %v491_v20 = vmin.f32 %v462_v2, %v464_v1  ;;  %v388_v1 = vmax.f32 %v387_v52, 0.0  ;;  %v337_v2 = vsub.f32 %v1131_v57, %v336_v54 }
 0x14b   : > { %vm1195_vm11 = vcmp.eq.f32.partialorder %v446_v18, 8.507059e+37  ;;  %v262_v18 = vperm.slane %v1135_v14, 4 }
 0x14c   : > { %v466_v19 = vsub.f32 %v459_v11, %v465_v9  ;;  %v492_v33 = vsub.f32 %v490_v25, %v491_v20  ;;  %v1165_v5 = vmul.f32 %v402_v61, %v388_v1  ;;  %v321_v11 = vperm.slane %v1112_v17, 3 }
 0x14d   : > { %v338_v56 = vand.u32 2147483647, %v337_v2 }
 0x14e   : > { %v467_v31 = vmax.f32 %v466_v19, 0.0  ;;  %v493_v40 = vmax.f32 %v492_v33, 0.0  ;;  %v1179_v19 = vsub.f32 %v1127_v55, %v321_v11  ;;  %v448_v55 = vand.u32 2147483648, %v1143_v44 }
 0x14f   : > { %v339_v20 = vadd.f32 %v338_v56, %v331_v10  ;;  %v356_v10 = vperm.slane %v1135_v14, 2 }
 0x150   : > { %v1138_v39 = vmul.f32 %v481_v35, %v467_v31  ;;  %v1145_v45 = vmul.f32 %v497_v43, %v493_v40  ;;  %v449_v61 = vor.u32 1.1754944e-38, %v448_v55 }
 0x152   : > { %vm520_vm13 = vweird.f32 %v1145_v45  ;;  %v524_v37 = vand.u32 2147483647, %v1145_v45  ;;  %v526_v38 = vand.u32 2147483648, %v1145_v45 }
 0x154   : > { %v527_v58 = vor.u32 1.1754944e-38, %v526_v38  ;;  %vm525_vm5 = vcmp.eq.f32.partialorder %v524_v37, 8.507059e+37 }
 0x17a   : > { %v485_v28 = vpop.permute.xlu2 %484 }
 0x17b   : > { %v488_v36 = vadd.f32 %v487_v24, %v485_v28  ;;  %v1184_v24 = vsub.f32 %v1133_v63, %v313_v13 }
 0x17d   : > { %v1141_v42 = vsub.f32 %v488_v36, %v1138_v39 }
 0x17f   : > { %774 = vrcp.f32 %v1141_v42  ;;  %v510_v28 = vand.u32 2147483648, %v1141_v42  ;;  %vm504_vm9 = vweird.f32 %v1141_v42  ;;  %v508_v31 = vand.u32 2147483647, %v1141_v42 }
 0x180   : > { %776 = vrcp.f32 %v1143_v44 }
 0x181   : > { %778 = vrcp.f32 %v1145_v45  ;;  %v511_v41 = vor.u32 1.1754944e-38, %v510_v28  ;;  %vm509_vm0 = vcmp.eq.f32.partialorder %v508_v31, 8.507059e+37 }
 0x183   : > { %v350_v33 = vpop.permute.xlu2 %349 }
 0x184   : > { %v353_v48 = vsub.f32 %v350_v33, %v352_v30 }
 0x185   : > { %v1150_v51 = vpop.eup %774 }
 0x186   : > { %v1154_v62 = vpop.eup %776  ;;  %v500_v59 = vmul.f32 %v1150_v51, %v1141_v42  ;;  %vm505_vm7 = vweird.f32 %v1150_v51 }
 0x187   : > { %v1157_v60 = vpop.eup %778  ;;  %v438_v6 = vmul.f32 %v1154_v62, %v1143_v44  ;;  %vm443_vm10 = vweird.f32 %v1154_v62  ;;  %vm1200_vm12 = vmor %vm504_vm9, %vm505_vm7 }
 0x188   : > { %v516_v4 = vmul.f32 %v1157_v60, %v1145_v45  ;;  %v501_v8 = vsub.f32 1.0, %v500_v59  ;;  %vm521_vm14 = vweird.f32 %v1157_v60  ;;  %vm1215_vm15 = vmor %vm442_vm8, %vm443_vm10 }
 0x189   : > { %v439_v57 = vsub.f32 1.0, %v438_v6  ;;  %vm1220_vm1 = vmor %vm520_vm13, %vm521_vm14 }
 0x18a   : > { %v517_v12 = vsub.f32 1.0, %v516_v4  ;;  %v502_v15 = vmul.f32 %v1150_v51, %v501_v8  ;;  %v354_v4 = vand.u32 2147483647, %v353_v48 }
 0x18b   : > { %v440_v22 = vmul.f32 %v1154_v62, %v439_v57  ;;  %v323_v57 = vand.u32 2147483647, %v1179_v19 }
 0x18c   : > { %v518_v21 = vmul.f32 %v1157_v60, %v517_v12  ;;  %v503_v25 = vadd.f32 %v1150_v51, %v502_v15  ;;  %v532_v12 = vperm.slane %v1135_v14, 3 }
 0x18d   : > { %v441_v17 = vadd.f32 %v1154_v62, %v440_v22 }
 0x18e   : > { %v519_v35 = vadd.f32 %v1157_v60, %v518_v21  ;;  %v507_v36 = vsel %vm1200_vm12, %v1150_v51, %v503_v25 }
 0x18f   : > { %v512_v52 = vsel %vm509_vm0, %v511_v41, %v507_v36  ;;  %v445_v54 = vsel %vm1215_vm15, %v1154_v62, %v441_v17  ;;  %v315_v62 = vand.u32 2147483647, %v1184_v24 }
 0x190   : > { %v523_v53 = vsel %vm1220_vm1, %v1157_v60, %v519_v35  ;;  %v513_v60 = vmul.f32 %v512_v52, %v1138_v39 }
 0x191   : > { %v316_v13 = vadd.f32 %v315_v62, %v1118_v27 }
 0x192   : > { %v407_v3 = vpop.permute.xlu1 %406 }
 0x193   : > { %v410_v7 = vadd.f32 %v409_v0, %v407_v3  ;;  %v514_v0 = vsub.f32 %v1145_v45, %v1141_v42  ;;  %v528_v42 = vsel %vm525_vm5, %v527_v58, %v523_v53  ;;  %v450_v45 = vsel %vm1195_vm11, %v449_v61, %v445_v54 }
 0x194   : > { %v324_v21 = vadd.f32 %v323_v57, %v316_v13 }
 0x195   : > { %v1170_v9 = vsub.f32 %v410_v7, %v1165_v5  ;;  %v529_v8 = vmul.f32 %v528_v42, %v514_v0 }
 0x197   : > { %780 = vrcp.f32 %v1170_v9  ;;  %v432_v46 = vand.u32 2147483648, %v1170_v9  ;;  %v430_v51 = vand.u32 2147483647, %v1170_v9  ;;  %vm426_vm3 = vweird.f32 %v1170_v9 }
 0x198   : > { %v436_v1 = vsub.f32 %v1143_v44, %v1170_v9  ;;  %v530_v56 = vsub.f32 %v513_v60, %v529_v8 }
 0x199   : > { %v433_v2 = vor.u32 1.1754944e-38, %v432_v46  ;;  %vm431_vm6 = vcmp.eq.f32.partialorder %v430_v51, 8.507059e+37 }
 0x19b   : > { %v342_v23 = vpop.permute.xlu1 %341 }
 0x19c   : > { %v345_v29 = vsub.f32 %v342_v23, %v344_v16 }
 0x19d   : > { %v781_v26 = vpop.eup %780 }
 0x19e   : > { %v422_v32 = vmul.f32 %v781_v26, %v1170_v9  ;;  %v346_v47 = vand.u32 2147483647, %v345_v29  ;;  %vm427_vm2 = vweird.f32 %v781_v26  ;;  %v451_v9 = vmul.f32 %v450_v45, %v436_v1 }
 0x19f   : > { %vm428_vm4 = vmor %vm426_vm3, %vm427_vm2 }
 0x1a0   : > { %v423_v40 = vsub.f32 1.0, %v422_v32  ;;  %v347_v3 = vadd.f32 %v346_v47, %v339_v20  ;;  %v531_v20 = vsub.f32 0.0, %v530_v56 }
 0x1a2   : > { %v424_v50 = vmul.f32 %v781_v26, %v423_v40  ;;  %v355_v11 = vadd.f32 %v354_v4, %v347_v3 }
 0x1a4   : > { %v425_v59 = vadd.f32 %v781_v26, %v424_v50  ;;  %v357_v16 = vmul.f32 %v356_v10, %v355_v11 }
 0x1a6   : > { %v429_v6 = vsel %vm428_vm4, %v781_v26, %v425_v59  ;;  %v358_v25 = vmax.f32 %v324_v21, %v357_v16 }
 0x1a7   : > { %v434_v7 = vsel %vm431_vm6, %v433_v2, %v429_v6 }
 0x1a8   : > { %v435_v44 = vmul.f32 %v434_v7, %v1165_v5 }
 0x1aa   : > { %v452_v39 = vsub.f32 %v435_v44, %v451_v9 }
 0x1ac   : > { %v453_v15 = vsub.f32 0.0, %v452_v39 }
 0x1ae   : > { %v533_v5 = vmul.f32 %v532_v12, %v453_v15 }
 0x1b0   : > { %v289_v22 = vpop.f32.mrf.mxu0  ;;  %v534_v23 = vadd.f32 %v533_v5, %v531_v20 }
 0x1b1   : > { %v290_v24 = vadd.f32 %v289_v22, %v262_v18 }
 0x1b2   : > { %v535_v19 = vmax.f32 %v453_v15, %v534_v23 }
 0x1b3   : > { %v359_v27 = vadd.f32 %v358_v25, %v290_v24 }
 0x1b5   : > { %v536_v14 = vadd.f32 %v535_v19, %v359_v27 }
 0x1b7   : > { %537 = vst [vmem:[%s220_s30] sm:$0xff] %v536_v14 }
 0x1b8   : > { %v291_v26 = vpop.f32.mrf.mxu0 }
 0x1b9   : > { %899 = shalt.err (!%p896_p9)
}
 0x1ba   : > { %676 = dma.vmem_to_hbm [thread:$0]  (%p1049_p4), %s552_s19, 128, %s554_s4, %s539_s5  }
 0x1bb PF: > { %s565_s16 = sand.u32 1, %s930_s12   ;;  %p1299_p10 = scmp.ge.s32.totalorder %s942_s15, 2 }
 0x1bc   : > { %s566_s25 = scalar_lea.sflag [#allocation4], %s565_s16 }
 0x1bd   : > { %p690_p13 = pnand %p1299_p10, %p1053_p6 }
 0x1bf   : > { %p691_p11 = pneg %p690_p13 }
 0x1c1   : > { %925 = dma.done.wait (%p691_p11), %s566_s25, 128  }
 0x1c2   : > { %927 = vsyncadd (%p691_p11), %s566_s25, 4294967168  ;;  %p17_p0 = scmp.ge.s32.totalorder %s1023_s6, 4   ;;  %s1300_s12 = smov %s934_s13 }
 0x1c3   : > { %s1301_s13 = smov %s938_s14  ;;  %s1302_s14 = smov %s1034_s9 }
 0x1c4   : > { %s1303_s15 = smov %s1023_s6  ;;  %19 = sbr.rel (!%p17_p0) target bundleno = 6 (0x6), region = 85 }
 0x1c9   :  { %572 = vsyncpa [#allocation3], 1 }
 0x1ca   :  { %574 = vsyncpa [#allocation3 + $0x1], 1 }
 0x1cb   :  { %575 = vsyncpa [#allocation6], 1 }
 0x1cc   :  { %576 = vsyncpa [#allocation4], 1 }
 0x1cd   :  { %578 = vsyncpa [#allocation4 + $0x1], 1 }

</bundles_post_ra>
